<compile_context>
chip_gen: v7x
topology: tpu7x:2x2x1
jax: 0.10.0
libtpu: 0.0.40
codegen_flags: <defaults>
</compile_context>

<pallas_src>
import jax
import jax.numpy as jnp
from jax.experimental import pallas as pl
from jax.experimental.pallas import tpu as pltpu


def mlp_kernel(x_ref, w1_ref, b1_ref, w2_ref, b2_ref, o_ref):
    # Hidden layer: (tb, I) @ (I, H) + (1, H), then sigmoid (EUP logistic path).
    h = jnp.dot(x_ref[...], w1_ref[...], preferred_element_type=jnp.float32)
    h = h + b1_ref[...]                      # broadcast (1, H) over the batch tile
    h = jax.nn.sigmoid(h)                    # f32 throughout
    # Output layer: (tb, H) @ (H, O) + (1, O)
    out = jnp.dot(h, w2_ref[...], preferred_element_type=jnp.float32)
    out = out + b2_ref[...]
    # TODO(synk): O=16 (<128 lanes) makes this a masked store (vst.msk); only if
    # profiling ever shows the store slot binding, relayout (tb,16)->(tb//8,128)
    # for a lane-dense slab and reshape back in the wrapper.
    o_ref[...] = out.astype(o_ref.dtype)


def _round_up(n, m):
    return ((n + m - 1) // m) * m


def neural_net_forward(x, w1, b1, w2, b2, *, tb=None):
    """x: (B, I) f32; w1: (I, H); b1: (H,); w2: (H, O); b2: (O,) -> (B, O) f32."""
    B, I = x.shape
    H = w1.shape[1]
    O = w2.shape[1]

    if tb is None:
        if B <= 1024:
            # Single tile, no padding / slicing wrapper ops.
            tb = _round_up(B, 8)
        else:
            # Large batch: big tiles to amortize the ~0.35 us/step overhead, but
            # keep >= 2 grid steps so the parallel axis uses both v7x TCs.
            tb = min(2048, _round_up(pl.cdiv(B, 2), 8))
    tb = max(8, _round_up(tb, 8))
    grid = pl.cdiv(B, tb)

    out = pl.pallas_call(
        mlp_kernel,
        out_shape=jax.ShapeDtypeStruct((B, O), jnp.float32),
        grid_spec=pltpu.PrefetchScalarGridSpec(
            num_scalar_prefetch=0,
            grid=(grid,),
            in_specs=[
                # x is tiled along the batch axis; feature dims are full-extent.
                pl.BlockSpec((tb, I), lambda i: (i, 0)),
                # Weights / biases: constant block index -> resident in VMEM,
                # no re-DMA per grid step.
                pl.BlockSpec((I, H), lambda i: (0, 0)),
                pl.BlockSpec((1, H), lambda i: (0, 0)),
                pl.BlockSpec((H, O), lambda i: (0, 0)),
                pl.BlockSpec((1, O), lambda i: (0, 0)),
            ],
            out_specs=pl.BlockSpec((tb, O), lambda i: (i, 0)),
        ),
        compiler_params=pltpu.CompilerParams(
            dimension_semantics=("parallel",),
        ),
    )(x, w1, b1.reshape(1, H), w2, b2.reshape(1, O))

    return out


def reference_forward(x, w1, b1, w2, b2):
    h = jax.nn.sigmoid(x @ w1 + b1)
    return h @ w2 + b2


if __name__ == "__main__":
    # Shapes implied by the module: batch=8, input_size=32, hidden_size=32, output_size=16
    B, input_size, hidden_size, output_size = 8, 32, 32, 16

    key = jax.random.PRNGKey(0)
    kx, kw1, kb1, kw2, kb2 = jax.random.split(key, 5)

    x = jax.random.normal(kx, (B, input_size), dtype=jnp.float32)

    # Deterministic parameter init (PyTorch-default-like uniform bounds).
    bound1 = 1.0 / (input_size ** 0.5)
    w1 = jax.random.uniform(kw1, (input_size, hidden_size), jnp.float32, -bound1, bound1)
    b1 = jax.random.uniform(kb1, (hidden_size,), jnp.float32, -bound1, bound1)
    bound2 = 1.0 / (hidden_size ** 0.5)
    w2 = jax.random.uniform(kw2, (hidden_size, output_size), jnp.float32, -bound2, bound2)
    b2 = jax.random.uniform(kb2, (output_size,), jnp.float32, -bound2, bound2)

    # Small batch: grid=1, no pad/slice anywhere.
    out = jax.block_until_ready(neural_net_forward(x, w1, b1, w2, b2))
    ref = reference_forward(x, w1, b1, w2, b2)
    assert out.shape == (B, output_size)
    assert jnp.allclose(out, ref, atol=1e-5, rtol=1e-5), "mismatch vs reference (B=8)"

    # Non-multiple-of-8 batch: single ragged block, OOB rows never written.
    B2 = 300
    x2 = jax.random.normal(jax.random.PRNGKey(1), (B2, input_size), dtype=jnp.float32)
    out2 = jax.block_until_ready(neural_net_forward(x2, w1, b1, w2, b2))
    ref2 = reference_forward(x2, w1, b1, w2, b2)
    assert out2.shape == (B2, output_size)
    assert jnp.allclose(out2, ref2, atol=1e-5, rtol=1e-5), "mismatch vs reference (B=300)"

    # Large batch: multi-tile grid (>= 2 steps), large batch tiles, ragged last block.
    B3 = 5000
    x3 = jax.random.normal(jax.random.PRNGKey(2), (B3, input_size), dtype=jnp.float32)
    out3 = jax.block_until_ready(neural_net_forward(x3, w1, b1, w2, b2))
    ref3 = reference_forward(x3, w1, b1, w2, b2)
    assert out3.shape == (B3, output_size)
    assert jnp.allclose(out3, ref3, atol=1e-5, rtol=1e-5), "mismatch vs reference (B=5000)"

    print("KERNEL_OK")
</pallas_src>

<mosaic_0001>
module attributes {stable_mosaic.version = 11 : i64} {
  func.func @mlp_kernel(%arg0: i32, %arg1: memref<8x32xf32, #tpu.memory_space<vmem>>, %arg2: memref<32x32xf32, #tpu.memory_space<vmem>>, %arg3: memref<1x32xf32, #tpu.memory_space<vmem>>, %arg4: memref<32x16xf32, #tpu.memory_space<vmem>>, %arg5: memref<1x16xf32, #tpu.memory_space<vmem>>, %arg6: memref<8x16xf32, #tpu.memory_space<vmem>>) attributes {dimension_semantics = [#tpu.dimension_semantics<parallel>], iteration_bounds = array<i64: 1>, scalar_prefetch = 0 : i64, scratch_operands = 0 : i64, tpu.core_type = #tpu.core_type<tc>, window_params = [{transform_indices = @transform_0, window_bounds = array<i64: 8, 32>}, {pipeline_mode = #tpu.pipeline_mode<synchronous>, transform_indices = @transform_1, window_bounds = array<i64: 32, 32>}, {pipeline_mode = #tpu.pipeline_mode<synchronous>, transform_indices = @transform_2, window_bounds = array<i64: 1, 32>}, {pipeline_mode = #tpu.pipeline_mode<synchronous>, transform_indices = @transform_3, window_bounds = array<i64: 32, 16>}, {pipeline_mode = #tpu.pipeline_mode<synchronous>, transform_indices = @transform_4, window_bounds = array<i64: 1, 16>}, {transform_indices = @transform_5, window_bounds = array<i64: 8, 16>}]} {
    %c0 = arith.constant 0 : index
    %c0_0 = arith.constant 0 : index
    %0 = vector.load %arg1[%c0, %c0_0] : memref<8x32xf32, #tpu.memory_space<vmem>>, vector<8x32xf32>
    %c0_1 = arith.constant 0 : index
    %c0_2 = arith.constant 0 : index
    %1 = vector.load %arg2[%c0_1, %c0_2] : memref<32x32xf32, #tpu.memory_space<vmem>>, vector<32x32xf32>
    %cst = arith.constant dense<0.000000e+00> : vector<8x32xf32>
    %2 = tpu.matmul %0, %1, %cst {dimension_numbers = #tpu.dot_dimension_numbers<[1], [0], [0], [1], [0, 0, 1, 1], [], []>} : vector<8x32xf32>, vector<32x32xf32>, vector<8x32xf32> -> vector<8x32xf32>
    %c0_3 = arith.constant 0 : index
    %c0_4 = arith.constant 0 : index
    %3 = vector.load %arg3[%c0_3, %c0_4] : memref<1x32xf32, #tpu.memory_space<vmem>>, vector<1x32xf32>
    %4 = vector.broadcast %3 : vector<1x32xf32> to vector<8x32xf32>
    %5 = arith.addf %2, %4 : vector<8x32xf32>
    %6 = arith.negf %5 : vector<8x32xf32>
    %7 = math.exp %6 : vector<8x32xf32>
    %cst_5 = arith.constant 1.000000e+00 : f32
    %8 = vector.broadcast %cst_5 : f32 to vector<8x32xf32>
    %9 = arith.addf %8, %7 : vector<8x32xf32>
    %10 = arith.divf %8, %9 : vector<8x32xf32>
    %c0_6 = arith.constant 0 : index
    %c0_7 = arith.constant 0 : index
    %11 = vector.load %arg4[%c0_6, %c0_7] : memref<32x16xf32, #tpu.memory_space<vmem>>, vector<32x16xf32>
    %cst_8 = arith.constant dense<0.000000e+00> : vector<8x16xf32>
    %12 = tpu.matmul %10, %11, %cst_8 {dimension_numbers = #tpu.dot_dimension_numbers<[1], [0], [0], [1], [0, 0, 1, 1], [], []>} : vector<8x32xf32>, vector<32x16xf32>, vector<8x16xf32> -> vector<8x16xf32>
    %c0_9 = arith.constant 0 : index
    %c0_10 = arith.constant 0 : index
    %13 = vector.load %arg5[%c0_9, %c0_10] : memref<1x16xf32, #tpu.memory_space<vmem>>, vector<1x16xf32>
    %14 = vector.broadcast %13 : vector<1x16xf32> to vector<8x16xf32>
    %15 = arith.addf %12, %14 : vector<8x16xf32>
    %c0_11 = arith.constant 0 : index
    %c0_12 = arith.constant 0 : index
    %16 = vector.load %arg6[%c0_11, %c0_12] : memref<8x16xf32, #tpu.memory_space<vmem>>, vector<8x16xf32>
    tpu.vector_store %arg6[%c0_11, %c0_12], %15 {strides = array<i32>} : memref<8x16xf32, #tpu.memory_space<vmem>>, vector<8x16xf32>,
    return
  }
  func.func @transform_0(%arg0: i32) -> (i32, i32) {
    %c0_i32 = arith.constant 0 : i32
    %c0_i32_0 = arith.constant 0 : i32
    return %arg0, %c0_i32 : i32, i32
  }
  func.func @transform_1(%arg0: i32) -> (i32, i32) {
    %c0_i32 = arith.constant 0 : i32
    %c0_i32_0 = arith.constant 0 : i32
    %c0_i32_1 = arith.constant 0 : i32
    return %c0_i32, %c0_i32_0 : i32, i32
  }
  func.func @transform_2(%arg0: i32) -> (i32, i32) {
    %c0_i32 = arith.constant 0 : i32
    %c0_i32_0 = arith.constant 0 : i32
    %c0_i32_1 = arith.constant 0 : i32
    return %c0_i32, %c0_i32_0 : i32, i32
  }
  func.func @transform_3(%arg0: i32) -> (i32, i32) {
    %c0_i32 = arith.constant 0 : i32
    %c0_i32_0 = arith.constant 0 : i32
    %c0_i32_1 = arith.constant 0 : i32
    return %c0_i32, %c0_i32_0 : i32, i32
  }
  func.func @transform_4(%arg0: i32) -> (i32, i32) {
    %c0_i32 = arith.constant 0 : i32
    %c0_i32_0 = arith.constant 0 : i32
    %c0_i32_1 = arith.constant 0 : i32
    return %c0_i32, %c0_i32_0 : i32, i32
  }
  func.func @transform_5(%arg0: i32) -> (i32, i32) {
    %c0_i32 = arith.constant 0 : i32
    %c0_i32_0 = arith.constant 0 : i32
    return %arg0, %c0_i32 : i32, i32
  }
}

</mosaic_0001>

<bundles_post_ra>
// kernel: tpu_custom_call.1
= control target key start
LH: loop header
LB: loop body
LE: loop exit
PB: predicated region body
PF: predicated region fallthrough
CT: control target
= control target key end

     0   :  { %v294_v3 = vmov 0.0|0.0   ;;  %vm295_vm0 = vmmov 0   ;;  %v296_v6 = vmov 0.0   ;;  %s375_s0 = inlined_call_operand.vmem [shape: f32[8,32], index: 0, kind: input, shape index: {}]   ;;  %s376_s1 = inlined_call_operand.vmem [shape: f32[32,32], index: 1, kind: input, shape index: {}]   ;;  %s377_s2 = inlined_call_operand.vmem [shape: f32[1,32], index: 2, kind: input, shape index: {}]   ;;  %s378_s3 = inlined_call_operand.vmem [shape: f32[32,16], index: 3, kind: input, shape index: {}]   ;;  %s379_s4 = inlined_call_operand.vmem [shape: f32[1,16], index: 4, kind: input, shape index: {}]   ;;  %s380_s5 = inlined_call_operand.hbm [shape: f32[8,16], index: 5, kind: output, shape index: {}]  }
   0x1   :  { %v22_v0 = vld [vmem:[%s376_s1] sm:$0xff]  ;;  %v23_v1 = vld [vmem:[%s376_s1 + $0x8] sm:$0xff]  ;;  %v24_v2 = vld [vmem:[%s376_s1 + $0x10] sm:$0xff]  ;;  %250 = vmatprep.subr.bf16.mxu0 %v294_v3  ;;  %236 = vmatprep.mubr.msk.f32.mxu0 %vm295_vm0, %v296_v6 }
   0x2   :  { %v251_v4 = vpack.c.bf16 %v23_v1, %v22_v0  ;;  %v25_v5 = vld [vmem:[%s376_s1 + $0x18] sm:$0xff]  ;;  %256 = vmatprep.subr.bf16.mxu1 %v294_v3  ;;  %247 = vmatprep.mubr.msk.f32.mxu1 %vm295_vm0, %v296_v6 }
   0x3   :  { %10 = vsyncpa [#allocation3], 0  ;;  %v254_v7 = vpack.c.bf16 %v25_v5, %v24_v2  ;;  %v21_v8 = vld [vmem:[%s375_s0] sm:$0xff]  ;;  %vm33_vm1 = vcmask 261120   ;;  %v114_v10 = vld [vmem:[%s378_s3 + $0x8] sm:$0xff]  ;;  %s297_s12 = smov [#allocation2]  }
   0x4   :  { %252 = vmatpush3.bf16.msra.mxu0 %v251_v4  ;;  %v113_v9 = vld [vmem:[%s378_s3] sm:$0xff]  ;;  %v115_v11 = vld [vmem:[%s378_s3 + $0x10] sm:$0xff]  ;;  %v116_v13 = vld [vmem:[%s378_s3 + $0x18] sm:$0xff]  ;;  %s205_s13 = sshll.u32 %s297_s12, 4  ;;  %vm197_vm2 = vcmask 130048   ;;  %s206_s13 = int_to_ptr.vmem [resolvable:$true] %s205_s13 }
   0x5   :  { %253 = vmatprep.subr.bf16.mxu0 %v294_v3  ;;  %v257_v12 = vpack.c.bf16 %v114_v10, %v113_v9  ;;  %v260_v14 = vpack.c.bf16 %v116_v13, %v115_v11  ;;  %v213_v15 = vld [vmem:[%s377_s2] ss:$0 sm:$0xff]  ;;  %s270_s2 = scalar_lea.vmem %s206_s13, 128  ;;  %p275_p1 = scmp.lt.s32.totalorder %s206_s13, %s206_s13 }
   0x6   :  { %v216_v23 = vld [vmem:[%s379_s4] ss:$0 sm:$0xff]  ;;  %p271_p0 = scmp.ne.s32.totalorder %s206_s13, %s270_s2  ;;  %p276_p2 = scmp.lt.s32.totalorder %s270_s2, %s270_s2 }
   0x7   :  { %258 = vmatpush3.bf16.msra.mxu1 %v257_v12 }
   0x8   :  { %255 = vmatpush3.bf16.msra.mxu0 %v254_v7  ;;  %259 = vmatprep.subr.bf16.mxu1 %v294_v3  ;;  %p277_p3 = por %p276_p2, %p275_p1 }
   0xa   :  { %p278_p4 = pnand %p277_p3, %p271_p0 }
   0xb   :  { %237 = vmatmul.mubr.msk.f32.vlgmr.msra.gmra.mrb[0].mxu0 %vm33_vm1, %v21_v8  ;;  %261 = vmatpush3.bf16.msra.mxu1 %v260_v14 }
  0xde   :  { %v103_v16 = vpop.f32.mrb[0].mxu0 }
  0xdf   :  { %v104_v17 = vadd.f32 %v213_v15, %v103_v16  ;;  %v238_v18 = vpop.f32.mrb[1].mxu0 }
  0xe1   :  { %v215_v19 = vmul.f32 -1.442695, %v104_v17 }
  0xe3   :  { %266 = vpow2.f32 %v215_v19 }
  0xed   :  { %v267_v20 = vpop.eup %266 }
  0xee   :  { %v110_v21 = vadd.f32 1.0, %v267_v20 }
  0xf0   :  { %268 = vrcp.f32 %v110_v21 }
  0xfa   :  { %v269_v22 = vpop.eup %268 }
  0xfb   :  { %248 = vmatmul.mubr.msk.f32.vlgmr.msra.gmra.mrb[0].mxu1 %vm33_vm1, %v269_v22 }
 0x1ce   :  { %v193_v24 = vpop.f32.mrb[0].mxu1 }
 0x1cf   :  { %v194_v25 = vadd.f32 %v216_v23, %v193_v24  ;;  %v249_v26 = vpop.f32.mrb[1].mxu1 }
 0x1d1   :  { %198 = vst.msk [vmem:[#allocation2] sm:$0xff] %vm197_vm2, %v194_v25 }
 0x1d2   :  { %281 = shalt.err (!%p278_p4)
}
 0x1d3   :  { %s282_s16 = scalar_lea.hbm %s380_s5, 128 }
 0x1d4   :  { %p283_p5 = scmp.ne.s32.totalorder %s380_s5, %s282_s16  ;;  %p286_p6 = scmp.lt.u32.totalorder %s282_s16, %s380_s5 }
 0x1d6   :  { %p288_p7 = pnand %p286_p6, %p283_p5 }
 0x1d8   :  { %291 = shalt.err (!%p288_p7)
}
 0x1d9   :  { %208 = dma.vmem_to_hbm [thread:$0]  %s206_s13, 128, %s380_s5, [#allocation3]  }
 0x1da   :  { %292 = dma.done.wait [#allocation3], 128  }
 0x1db   :  { %293 = vsyncadd [#allocation3], 4294967168 }
 0x1dc   :  { %212 = vsyncpa [#allocation3], 1 }

</bundles_post_ra>
